<compile_context>
chip_gen: v7x
topology: tpu7x:2x2x1
jax: 0.10.0
libtpu: 0.0.40
codegen_flags: <defaults>
</compile_context>

<pallas_src>
from functools import partial

import jax
import jax.numpy as jnp
from jax import lax
from jax.experimental import pallas as pl
from jax.experimental.pallas import tpu as pltpu

VMEM_LIMIT_BYTES = 48 * 1024 * 1024  # explicit, < v7x 64 MiB physical VMEM


# ----------------------------------------------------------------------------
# Kernel 1: fused linear (+bias) with optional L2-normalize along the last dim.
# bf16 MXU operands, f32 accumulation.  Normalize uses rsqrt (EUP) with the
# same eps semantics as F.normalize (1/max(||x||, 1e-12)).
# ----------------------------------------------------------------------------
def _linear_kernel(x_ref, w_ref, b_ref, o_ref, *, normalize):
    x = x_ref[...].astype(jnp.bfloat16)
    w = w_ref[...].astype(jnp.bfloat16)
    y = jnp.dot(x, w, preferred_element_type=jnp.float32) + b_ref[...]
    if normalize:
        sumsq = jnp.sum(y * y, axis=-1, keepdims=True)
        y = y * lax.rsqrt(jnp.maximum(sumsq, 1e-24))
    o_ref[...] = y.astype(o_ref.dtype)


def pallas_linear(x, w, b, *, normalize=False, block_m=512):
    M, K = x.shape
    K2, N = w.shape
    assert K == K2
    if M <= block_m:
        tm, Mp = M, M
    else:
        tm = block_m
        Mp = ((M + tm - 1) // tm) * tm
    if Mp != M:
        x = jnp.pad(x, ((0, Mp - M), (0, 0)))

    out = pl.pallas_call(
        partial(_linear_kernel, normalize=normalize),
        out_shape=jax.ShapeDtypeStruct((Mp, N), jnp.float32),
        grid=(Mp // tm,),
        in_specs=[
            pl.BlockSpec((tm, K), lambda i: (i, 0)),   # row tile of x
            pl.BlockSpec((K, N), lambda i: (0, 0)),    # full weight, resident
            pl.BlockSpec((1, N), lambda i: (0, 0)),    # bias, resident
        ],
        out_specs=pl.BlockSpec((tm, N), lambda i: (i, 0)),
        compiler_params=pltpu.CompilerParams(
            dimension_semantics=("parallel",),
            vmem_limit_bytes=VMEM_LIMIT_BYTES,
        ),
    )(x, w, b.reshape(1, N))
    return out if Mp == M else out[:M]


# ----------------------------------------------------------------------------
# Kernel 2: CLIP contrastive loss (non-personalized tau), tiled/online LSE.
#   sim[i, c] = <text_i, image_c> / temp
#   loss = 0.5 * (mean_row_lse(sim) + mean_col_lse(sim)) - mean(diag(sim))
# Grid iterates over key (image) column blocks; text features stay resident.
# ----------------------------------------------------------------------------
def _clip_loss_kernel(txt_ref, img_ref, o_ref, m_sc, l_sc, col_sc, diag_sc,
                      *, inv_temp, batch):
    j = pl.program_id(0)
    tk = img_ref.shape[0]

    @pl.when(j == 0)
    def _():
        m_sc[...] = jnp.full_like(m_sc, -jnp.inf)
        l_sc[...] = jnp.zeros_like(l_sc)
        col_sc[...] = jnp.zeros_like(col_sc)
        diag_sc[...] = jnp.zeros_like(diag_sc)

    # Scale once on the (smaller) feature matrix instead of dividing sim.
    txt_f32 = txt_ref[...] * inv_temp            # (B, D) f32
    img_f32 = img_ref[...]                       # (tk, D) f32
    txt = txt_f32.astype(jnp.bfloat16)
    img = img_f32.astype(jnp.bfloat16)

    # Contract dim 1 of both operands directly on the MXU (no .T / XLU transpose).
    sim = lax.dot_general(txt, img, (((1,), (1,)), ((), ())),
                          preferred_element_type=jnp.float32)   # (B, tk)

    # --- online row LSE (text -> image direction) ---
    m_new = jnp.maximum(m_sc[...], jnp.max(sim, axis=-1, keepdims=True))
    l_sc[...] = l_sc[...] * jnp.exp(m_sc[...] - m_new) + \
        jnp.sum(jnp.exp(sim - m_new), axis=-1, keepdims=True)
    m_sc[...] = m_new

    # --- column LSE (image -> text direction): complete within this block ---
    cmax = jnp.max(sim, axis=0, keepdims=True)                   # (1, tk)
    col_lse = cmax + jnp.log(jnp.sum(jnp.exp(sim - cmax), axis=0, keepdims=True))
    col_sc[...] += jnp.sum(col_lse, keepdims=True)

    # --- diagonal (positive pairs) without a BxB iota mask ---
    start = pl.multiple_of(j * tk, tk)
    txt_diag = txt_ref[pl.ds(start, tk), :] * inv_temp           # (tk, D)
    diag_sc[...] += jnp.sum(txt_diag * img_f32, keepdims=True)

    @pl.when(j == pl.num_programs(0) - 1)
    def _():
        row_lse_mean = jnp.mean(m_sc[...] + jnp.log(l_sc[...]))
        col_lse_mean = col_sc[0, 0] / batch
        diag_mean = diag_sc[0, 0] / batch
        loss = 0.5 * (row_lse_mean + col_lse_mean) - diag_mean
        o_ref[...] = jnp.full((1, 1), loss, dtype=o_ref.dtype)


def pallas_clip_loss(image_feat, text_feat, temp, *, block_k=256):
    B, D = image_feat.shape
    if B <= block_k:
        tk = B
    else:
        assert B % block_k == 0, "batch must be a multiple of block_k"
        tk = block_k
    inv_temp = 1.0 / float(temp)

    out = pl.pallas_call(
        partial(_clip_loss_kernel, inv_temp=inv_temp, batch=float(B)),
        out_shape=jax.ShapeDtypeStruct((1, 1), jnp.float32),
        grid=(B // tk,),
        in_specs=[
            pl.BlockSpec((B, D), lambda j: (0, 0)),   # text feats: resident
            pl.BlockSpec((tk, D), lambda j: (j, 0)),  # image feats: key block
        ],
        out_specs=pl.BlockSpec((1, 1), lambda j: (0, 0)),
        scratch_shapes=[
            pltpu.VMEM((B, 1), jnp.float32),   # running row max
            pltpu.VMEM((B, 1), jnp.float32),   # running row sum-exp
            pltpu.VMEM((1, 1), jnp.float32),   # sum of column LSEs
            pltpu.VMEM((1, 1), jnp.float32),   # sum of diagonal entries
        ],
        compiler_params=pltpu.CompilerParams(
            dimension_semantics=("arbitrary",),
            vmem_limit_bytes=VMEM_LIMIT_BYTES,
        ),
    )(text_feat, image_feat)
    return out[0, 0]


# ----------------------------------------------------------------------------
# CLIP forward (mirrors CLIP.forward for ita_type='clip', world_size=1,
# learnable_temp=False, personalized_tau=False).
# ----------------------------------------------------------------------------
def clip_forward(params, image, input_ids, attention_mask, idx, text_idx,
                 epoch, max_epoch, it, *, temp=0.01, patch=8):
    # ---- visual encoder stand-in: patch-embed matmul (Pallas) + mean pool ----
    # TODO(synk): timm visual encoder replaced by a synthetic ViT-style
    # patch-embed + mean pool (pretrained backbone has no Pallas equivalent).
    # TODO(synk): patchify is a host-side reshape/transpose; fusing it into the
    # patch-embed pallas_call via an index_map over (B, ph, pw) would remove
    # one extra HBM round-trip at real image sizes.
    B, C, H, W = image.shape
    ph = pw = patch
    patches = image.reshape(B, C, H // ph, ph, W // pw, pw)
    patches = patches.transpose(0, 2, 4, 1, 3, 5).reshape(
        B * (H // ph) * (W // pw), C * ph * pw)

    # Zero-pad the contraction dim to a multiple of 256 so the 256x256 MXU
    # tiles (v6e/v7x) are fully used; zero rows in the weight keep the result
    # identical.
    k = patches.shape[1]
    k_pad = (-k) % 256
    if k_pad:
        patches = jnp.pad(patches, ((0, 0), (0, k_pad)))
        patch_w = jnp.pad(params["patch_w"], ((0, k_pad), (0, 0)))
    else:
        patch_w = params["patch_w"]

    patch_tokens = pallas_linear(patches, patch_w, params["patch_b"])
    num_patches = (H // ph) * (W // pw)
    image_embeds = patch_tokens.reshape(B, num_patches, -1).mean(axis=1)

    # vision_proj + F.normalize (fused Pallas kernel)
    image_feat = pallas_linear(image_embeds, params["vision_proj_w"],
                               params["vision_proj_b"], normalize=True)

    # ---- text encoder stand-in: embedding lookup, take CLS (position 0) ----
    # TODO(synk): HuggingFace text encoder replaced by an embedding-table
    # lookup of the CLS token; attention_mask is therefore unused here.
    cls_hidden = jnp.take(params["text_emb"], input_ids[:, 0], axis=0)  # (B, 768)

    # text_proj + F.normalize (fused Pallas kernel)
    text_feat = pallas_linear(cls_hidden, params["text_proj_w"],
                              params["text_proj_b"], normalize=True)

    # ---- CLIP_Loss (non-personalized, world_size=1) ----
    # TODO(synk): distributed concat_all_gather / GatherLayer omitted (single device).
    loss_ita = pallas_clip_loss(image_feat, text_feat, temp)

    avg_tau = jnp.asarray(temp, jnp.float32)
    avg_image_tau = avg_tau
    avg_text_tau = avg_tau
    cur_eta = None
    grad_tau_image = None
    grad_tau_text = None
    b_I = None
    b_T = None
    return (loss_ita, avg_image_tau, avg_text_tau, cur_eta,
            grad_tau_image, grad_tau_text, b_I, b_T)


# ----------------------------------------------------------------------------
# Deterministic parameter init + example run.
# ----------------------------------------------------------------------------
def init_params(key, *, in_ch=3, patch=8, vis_dim=256, text_hidden=768,
                embed_dim=128, vocab=1000):
    ks = jax.random.split(key, 7)
    patch_dim = in_ch * patch * patch
    return {
        "patch_w": 0.02 * jax.random.normal(ks[0], (patch_dim, vis_dim), jnp.float32),
        "patch_b": jnp.zeros((vis_dim,), jnp.float32),
        "vision_proj_w": 0.02 * jax.random.normal(ks[1], (vis_dim, embed_dim), jnp.float32),
        "vision_proj_b": 0.01 * jax.random.normal(ks[2], (embed_dim,), jnp.float32),
        "text_emb": 0.02 * jax.random.normal(ks[3], (vocab, text_hidden), jnp.float32),
        "text_proj_w": 0.02 * jax.random.normal(ks[4], (text_hidden, embed_dim), jnp.float32),
        "text_proj_b": 0.01 * jax.random.normal(ks[5], (embed_dim,), jnp.float32),
    }


if __name__ == "__main__":
    key = jax.random.PRNGKey(0)
    k_param, k_img, k_tok = jax.random.split(key, 3)

    B, C, H, W = 8, 3, 16, 16
    L, vocab = 8, 1000

    params = init_params(k_param, in_ch=C, vocab=vocab)
    image = jax.random.normal(k_img, (B, C, H, W), jnp.float32)       # NCHW
    input_ids = jax.random.randint(k_tok, (B, L), 0, vocab, jnp.int32)
    attention_mask = jnp.ones((B, L), jnp.int32)
    idx = jnp.arange(B, dtype=jnp.int32)
    text_idx = jnp.arange(B, dtype=jnp.int32)

    outs = clip_forward(params, image, input_ids, attention_mask,
                        idx, text_idx, epoch=0, max_epoch=1, it=0, temp=0.01)
    loss_ita, avg_image_tau, avg_text_tau = outs[0], outs[1], outs[2]
    jax.block_until_ready(loss_ita)
    jax.block_until_ready(avg_image_tau)
    jax.block_until_ready(avg_text_tau)
    assert loss_ita.shape == () and jnp.isfinite(loss_ita)
    print("KERNEL_OK")
</pallas_src>

<mosaic_0001>
module attributes {stable_mosaic.version = 11 : i64} {
  func.func @_linear_kernel(%arg0: i32, %arg1: memref<32x256xf32, #tpu.memory_space<vmem>>, %arg2: memref<256x256xf32, #tpu.memory_space<vmem>>, %arg3: memref<1x256xf32, #tpu.memory_space<vmem>>, %arg4: memref<32x256xf32, #tpu.memory_space<vmem>>) attributes {dimension_semantics = [#tpu.dimension_semantics<parallel>], iteration_bounds = array<i64: 1>, scalar_prefetch = 0 : i64, scratch_operands = 0 : i64, tpu.core_type = #tpu.core_type<tc>, window_params = [{transform_indices = @transform_0, window_bounds = array<i64: 32, 256>}, {pipeline_mode = #tpu.pipeline_mode<synchronous>, transform_indices = @transform_1, window_bounds = array<i64: 256, 256>}, {pipeline_mode = #tpu.pipeline_mode<synchronous>, transform_indices = @transform_2, window_bounds = array<i64: 1, 256>}, {transform_indices = @transform_3, window_bounds = array<i64: 32, 256>}]} {
    %c0 = arith.constant 0 : index
    %c0_0 = arith.constant 0 : index
    %0 = vector.load %arg1[%c0, %c0_0] : memref<32x256xf32, #tpu.memory_space<vmem>>, vector<32x256xf32>
    %1 = arith.truncf %0 : vector<32x256xf32> to vector<32x256xbf16>
    %c0_1 = arith.constant 0 : index
    %c0_2 = arith.constant 0 : index
    %2 = vector.load %arg2[%c0_1, %c0_2] : memref<256x256xf32, #tpu.memory_space<vmem>>, vector<256x256xf32>
    %3 = arith.truncf %2 : vector<256x256xf32> to vector<256x256xbf16>
    %cst = arith.constant dense<0.000000e+00> : vector<32x256xf32>
    %4 = tpu.matmul %1, %3, %cst {dimension_numbers = #tpu.dot_dimension_numbers<[1], [0], [0], [1], [0, 0, 1, 1], [], []>} : vector<32x256xbf16>, vector<256x256xbf16>, vector<32x256xf32> -> vector<32x256xf32>
    %c0_3 = arith.constant 0 : index
    %c0_4 = arith.constant 0 : index
    %5 = vector.load %arg3[%c0_3, %c0_4] : memref<1x256xf32, #tpu.memory_space<vmem>>, vector<1x256xf32>
    %6 = vector.broadcast %5 : vector<1x256xf32> to vector<32x256xf32>
    %7 = arith.addf %4, %6 : vector<32x256xf32>
    %c0_5 = arith.constant 0 : index
    %c0_6 = arith.constant 0 : index
    %8 = vector.load %arg4[%c0_5, %c0_6] : memref<32x256xf32, #tpu.memory_space<vmem>>, vector<32x256xf32>
    tpu.vector_store %arg4[%c0_5, %c0_6], %7 {strides = array<i32>} : memref<32x256xf32, #tpu.memory_space<vmem>>, vector<32x256xf32>,
    return
  }
  func.func @transform_0(%arg0: i32) -> (i32, i32) {
    %c0_i32 = arith.constant 0 : i32
    %c0_i32_0 = arith.constant 0 : i32
    return %arg0, %c0_i32 : i32, i32
  }
  func.func @transform_1(%arg0: i32) -> (i32, i32) {
    %c0_i32 = arith.constant 0 : i32
    %c0_i32_0 = arith.constant 0 : i32
    %c0_i32_1 = arith.constant 0 : i32
    return %c0_i32, %c0_i32_0 : i32, i32
  }
  func.func @transform_2(%arg0: i32) -> (i32, i32) {
    %c0_i32 = arith.constant 0 : i32
    %c0_i32_0 = arith.constant 0 : i32
    %c0_i32_1 = arith.constant 0 : i32
    return %c0_i32, %c0_i32_0 : i32, i32
  }
  func.func @transform_3(%arg0: i32) -> (i32, i32) {
    %c0_i32 = arith.constant 0 : i32
    %c0_i32_0 = arith.constant 0 : i32
    return %arg0, %c0_i32 : i32, i32
  }
}

</mosaic_0001>

<bundles_post_ra>
// kernel: tpu_custom_call.1
= control target key start
LH: loop header
LB: loop body
LE: loop exit
PB: predicated region body
PF: predicated region fallthrough
CT: control target
= control target key end

     0   :  { %8 = vsyncpa [#allocation3], 0  ;;  %s424_s0 = inlined_call_operand.hbm [shape: f32[32,256], index: 0, kind: input, shape index: {}]   ;;  %s425_s1 = inlined_call_operand.hbm [shape: f32[256,256], index: 1, kind: input, shape index: {}]   ;;  %s426_s2 = inlined_call_operand.vmem [shape: f32[1,256], index: 2, kind: input, shape index: {}]   ;;  %s427_s3 = inlined_call_operand.hbm [shape: f32[32,256], index: 3, kind: output, shape index: {}]  }
   0x1   :  { %9 = vsyncpa [#allocation6], 0 }
   0x2   :  { %10 = vsyncpa [#allocation4], 0  ;;  %s351_s12 = smov [#allocation2]   ;;  %s279_s16 = scalar_lea.hbm %s424_s0, 1024 }
   0x3   :  { %s16_s13 = sshll.u32 %s351_s12, 4  ;;  %p280_p0 = scmp.ne.s32.totalorder %s424_s0, %s279_s16  ;;  %s17_s13 = int_to_ptr.vmem [resolvable:$true] %s16_s13 }
   0x4   :  { %p283_p1 = scmp.lt.u32.totalorder %s279_s16, %s424_s0 }
   0x6   :  { %p285_p2 = pnand %p283_p1, %p280_p0 }
   0x8   :  { %288 = shalt.err (!%p285_p2)
}
   0x9   :  { %s289_s21 = scalar_lea.vmem %s17_s13, 1024  ;;  %p294_p4 = scmp.lt.s32.totalorder %s17_s13, %s17_s13 }
   0xa   :  { %p290_p3 = scmp.ne.s32.totalorder %s17_s13, %s289_s21  ;;  %p295_p5 = scmp.lt.s32.totalorder %s289_s21, %s289_s21 }
   0xc   :  { %p296_p6 = por %p295_p5, %p294_p4 }
   0xe   :  { %p297_p7 = pnand %p296_p6, %p290_p3 }
  0x10   :  { %300 = shalt.err (!%p297_p7)
}
  0x11   :  { %s352_s22 = smov 256   ;;  %s353_s23 = smov 16  }
  0x12   :  { %22 = dma.hbm_to_vmem [thread:$0]  %s424_s0, 1024, %s17_s13, [#allocation3], %s352_s22, %s352_s22, %s353_s23  }
  0x13   :  { %s354_s26 = smov [#allocation5]   ;;  %s301_s30 = scalar_lea.hbm %s425_s1, 8192 }
  0x14   :  { %s28_s27 = sshll.u32 %s354_s26, 4  ;;  %p302_p8 = scmp.ne.s32.totalorder %s425_s1, %s301_s30  ;;  %s29_s27 = int_to_ptr.vmem [resolvable:$true] %s28_s27 }
  0x15   :  { %p305_p9 = scmp.lt.u32.totalorder %s301_s30, %s425_s1 }
  0x17   :  { %p307_p10 = pnand %p305_p9, %p302_p8 }
  0x19   :  { %310 = shalt.err (!%p307_p10)
}
  0x1a   :  { %s311_s8 = scalar_lea.vmem %s29_s27, 8192  ;;  %p316_p12 = scmp.lt.s32.totalorder %s29_s27, %s29_s27 }
  0x1b   :  { %p312_p11 = scmp.ne.s32.totalorder %s29_s27, %s311_s8  ;;  %p317_p13 = scmp.lt.s32.totalorder %s311_s8, %s311_s8 }
  0x1d   :  { %p318_p0 = por %p317_p13, %p316_p12 }
  0x1f   :  { %p319_p1 = pnand %p318_p0, %p312_p11 }
  0x21   :  { %322 = shalt.err (!%p319_p1)
}
  0x22   :  { %34 = dma.hbm_to_vmem [thread:$0]  %s425_s1, 8192, %s29_s27, [#allocation6], %s352_s22, %s352_s22, %s353_s23  }
  0x23   :  { %345 = dma.done.wait [#allocation3], 1024  }
  0x24   :  { %346 = vsyncadd [#allocation3], 4294966272 }
  0x25   :  { %347 = dma.done.wait [#allocation6], 8192  }
  0x26   :  { %348 = vsyncadd [#allocation6], 4294959104  ;;  %v56_v0 = vld [vmem:[#allocation5 + $0x8] sm:$0xff]  ;;  %v58_v1 = vld [vmem:[#allocation5 + $0x18] sm:$0xff]  ;;  %s355_s11 = smov [#allocation7]  }
  0x27   :  { %v55_v2 = vld [vmem:[#allocation5] sm:$0xff]  ;;  %v120_v3 = vpack.c.bf16 %v58_v1, %v56_v0  ;;  %v57_v4 = vld [vmem:[#allocation5 + $0x10] sm:$0xff]  ;;  %v60_v5 = vld [vmem:[#allocation5 + $0x28] sm:$0xff]  ;;  %s229_s12 = sshll.u32 %s355_s11, 4  ;;  %s230_s12 = int_to_ptr.vmem [resolvable:$true] %s229_s12 }
  0x28   :  { %v62_v6 = vld [vmem:[#allocation5 + $0x38] sm:$0xff]  ;;  %v119_v7 = vpack.c.bf16 %v57_v4, %v55_v2  ;;  %v59_v9 = vld [vmem:[#allocation5 + $0x20] sm:$0xff]  ;;  %v61_v10 = vld [vmem:[#allocation5 + $0x30] sm:$0xff]  ;;  %p328_p3 = scmp.lt.s32.totalorder %s230_s12, %s230_s12 }
  0x29   :  { %v122_v8 = vpack.c.bf16 %v62_v6, %v60_v5  ;;  %v64_v11 = vld [vmem:[#allocation5 + $0x48] sm:$0xff]  ;;  %163 = vmatprep.subr.bf16.mxu0 %v120_v3  ;;  %242 = vmatprep.subr.bf16.mxu1 %v120_v3  ;;  %v66_v12 = vld [vmem:[#allocation5 + $0x58] sm:$0xff]  ;;  %v121_v13 = vpack.c.bf16 %v61_v10, %v59_v9  ;;  %v63_v15 = vld [vmem:[#allocation5 + $0x40] sm:$0xff] }
  0x2a   :  { %164 = vmatpush1.bf16.msra.mxu0 %v119_v7  ;;  %258 = vmatpush1.bf16.msra.mxu1 %v119_v7  ;;  %v124_v14 = vpack.c.bf16 %v66_v12, %v64_v11  ;;  %v65_v16 = vld [vmem:[#allocation5 + $0x50] sm:$0xff]  ;;  %v68_v17 = vld [vmem:[#allocation5 + $0x68] sm:$0xff]  ;;  %v70_v18 = vld [vmem:[#allocation5 + $0x78] sm:$0xff] }
  0x2b   :  { %165 = vmatprep.subr.bf16.mxu0 %v122_v8  ;;  %243 = vmatprep.subr.bf16.mxu1 %v122_v8  ;;  %v123_v19 = vpack.c.bf16 %v65_v16, %v63_v15  ;;  %v126_v20 = vpack.c.bf16 %v70_v18, %v68_v17  ;;  %v67_v21 = vld [vmem:[#allocation5 + $0x60] sm:$0xff]  ;;  %v69_v22 = vld [vmem:[#allocation5 + $0x70] sm:$0xff]  ;;  %v72_v23 = vld [vmem:[#allocation5 + $0x88] sm:$0xff] }
  0x2c   :  { %v74_v24 = vld [vmem:[#allocation5 + $0x98] sm:$0xff]  ;;  %v125_v25 = vpack.c.bf16 %v69_v22, %v67_v21  ;;  %v71_v27 = vld [vmem:[#allocation5 + $0x80] sm:$0xff]  ;;  %v73_v28 = vld [vmem:[#allocation5 + $0x90] sm:$0xff] }
  0x2d   :  { %v128_v26 = vpack.c.bf16 %v74_v24, %v72_v23  ;;  %v76_v29 = vld [vmem:[#allocation5 + $0xa8] sm:$0xff]  ;;  %v78_v30 = vld [vmem:[#allocation5 + $0xb8] sm:$0xff]  ;;  %v127_v31 = vpack.c.bf16 %v73_v28, %v71_v27  ;;  %v75_v33 = vld [vmem:[#allocation5 + $0xa0] sm:$0xff] }
  0x2e   :  { %166 = vmatpush1.bf16.msra.mxu0 %v121_v13  ;;  %259 = vmatpush1.bf16.msra.mxu1 %v121_v13  ;;  %v130_v32 = vpack.c.bf16 %v78_v30, %v76_v29  ;;  %v77_v34 = vld [vmem:[#allocation5 + $0xb0] sm:$0xff]  ;;  %v80_v35 = vld [vmem:[#allocation5 + $0xc8] sm:$0xff]  ;;  %v82_v36 = vld [vmem:[#allocation5 + $0xd8] sm:$0xff] }
  0x2f   :  { %167 = vmatprep.subr.bf16.mxu0 %v124_v14  ;;  %244 = vmatprep.subr.bf16.mxu1 %v124_v14  ;;  %v129_v37 = vpack.c.bf16 %v77_v34, %v75_v33  ;;  %v79_v38 = vld [vmem:[#allocation5 + $0xc0] sm:$0xff]  ;;  %v81_v39 = vld [vmem:[#allocation5 + $0xd0] sm:$0xff]  ;;  %v132_v40 = vpack.c.bf16 %v82_v36, %v80_v35  ;;  %v84_v41 = vld [vmem:[#allocation5 + $0xe8] sm:$0xff] }
  0x30   :  { %v44_v42 = vld [vmem:[#allocation2 + $0x8] sm:$0xff]  ;;  %v46_v43 = vld [vmem:[#allocation2 + $0x18] sm:$0xff]  ;;  %v131_v49 = vpack.c.bf16 %v81_v39, %v79_v38  ;;  %v83_v51 = vld [vmem:[#allocation5 + $0xe0] sm:$0xff] }
  0x31   :  { %v86_v44 = vld [vmem:[#allocation5 + $0xf8] sm:$0xff]  ;;  %v52_v45 = vpack.c.bf16 %v46_v43, %v44_v42  ;;  %v48_v46 = vld [vmem:[#allocation2 + $0x28] sm:$0xff]  ;;  %v85_v52 = vld [vmem:[#allocation5 + $0xf0] sm:$0xff] }
  0x32   :  { %168 = vmatpush1.bf16.msra.mxu0 %v123_v19  ;;  %260 = vmatpush1.bf16.msra.mxu1 %v123_v19  ;;  %v50_v47 = vld [vmem:[#allocation2 + $0x38] sm:$0xff]  ;;  %v134_v50 = vpack.c.bf16 %v86_v44, %v84_v41  ;;  %v88_v53 = vld [vmem:[#allocation5 + $0x108] sm:$0xff]  ;;  %v133_v55 = vpack.c.bf16 %v85_v52, %v83_v51  ;;  %v87_v57 = vld [vmem:[#allocation5 + $0x100] sm:$0xff]  ;;  %v153_v44 = vlaneseq }
  0x33   :  { %169 = vmatprep.subr.bf16.mxu0 %v126_v20  ;;  %245 = vmatprep.subr.bf16.mxu1 %v126_v20  ;;  %v54_v48 = vpack.c.bf16 %v50_v47, %v48_v46  ;;  %v90_v54 = vld [vmem:[#allocation5 + $0x118] sm:$0xff]  ;;  %v89_v58 = vld [vmem:[#allocation5 + $0x110] sm:$0xff]  ;;  %v92_v59 = vld [vmem:[#allocation5 + $0x128] sm:$0xff] }
  0x34   :  { %195 = vmatprep.mubr.bf16.mxu0 %v52_v45  ;;  %v136_v56 = vpack.c.bf16 %v90_v54, %v88_v53  ;;  %v94_v60 = vld [vmem:[#allocation5 + $0x138] sm:$0xff]  ;;  %v135_v61 = vpack.c.bf16 %v89_v58, %v87_v57  ;;  %v91_v63 = vld [vmem:[#allocation5 + $0x120] sm:$0xff]  ;;  %v93_v0 = vld [vmem:[#allocation5 + $0x130] sm:$0xff]  ;;  %v154_v45 = vshrl.u32 %v153_v44, 7 }
  0x35   :  { %205 = vmatprep.mubr.bf16.mxu1 %v54_v48  ;;  %v138_v62 = vpack.c.bf16 %v94_v60, %v92_v59  ;;  %v96_v1 = vld [vmem:[#allocation5 + $0x148] sm:$0xff]  ;;  %v98_v2 = vld [vmem:[#allocation5 + $0x158] sm:$0xff]  ;;  %v137_v3 = vpack.c.bf16 %v93_v0, %v91_v63  ;;  %v95_v5 = vld [vmem:[#allocation5 + $0x140] sm:$0xff] }
  0x36   :  { %170 = vmatpush1.bf16.msra.mxu0 %v125_v25  ;;  %261 = vmatpush1.bf16.msra.mxu1 %v125_v25  ;;  %v140_v4 = vpack.c.bf16 %v98_v2, %v96_v1  ;;  %v97_v6 = vld [vmem:[#allocation5 + $0x150] sm:$0xff]  ;;  %v100_v7 = vld [vmem:[#allocation5 + $0x168] sm:$0xff]  ;;  %v102_v8 = vld [vmem:[#allocation5 + $0x178] sm:$0xff]  ;;  %v155_v46 = vsub.s32 0, %v154_v45  ;;  %v159_v48 = vsub.s32 1, %v154_v45 }
  0x37   :  { %171 = vmatprep.subr.bf16.mxu0 %v128_v26  ;;  %246 = vmatprep.subr.bf16.mxu1 %v128_v26  ;;  %v139_v9 = vpack.c.bf16 %v97_v6, %v95_v5  ;;  %v142_v10 = vpack.c.bf16 %v102_v8, %v100_v7  ;;  %v99_v11 = vld [vmem:[#allocation5 + $0x160] sm:$0xff]  ;;  %v101_v12 = vld [vmem:[#allocation5 + $0x170] sm:$0xff]  ;;  %v104_v13 = vld [vmem:[#allocation5 + $0x188] sm:$0xff] }
  0x38   :  { %v106_v14 = vld [vmem:[#allocation5 + $0x198] sm:$0xff]  ;;  %v141_v15 = vpack.c.bf16 %v101_v12, %v99_v11  ;;  %v103_v17 = vld [vmem:[#allocation5 + $0x180] sm:$0xff]  ;;  %v105_v18 = vld [vmem:[#allocation5 + $0x190] sm:$0xff] }
  0x39   :  { %v144_v16 = vpack.c.bf16 %v106_v14, %v104_v13  ;;  %v108_v19 = vld [vmem:[#allocation5 + $0x1a8] sm:$0xff]  ;;  %v110_v20 = vld [vmem:[#allocation5 + $0x1b8] sm:$0xff]  ;;  %v143_v21 = vpack.c.bf16 %v105_v18, %v103_v17  ;;  %v107_v23 = vld [vmem:[#allocation5 + $0x1a0] sm:$0xff] }
  0x3a   :  { %172 = vmatpush1.bf16.msra.mxu0 %v127_v31  ;;  %262 = vmatpush1.bf16.msra.mxu1 %v127_v31  ;;  %v146_v22 = vpack.c.bf16 %v110_v20, %v108_v19  ;;  %v109_v24 = vld [vmem:[#allocation5 + $0x1b0] sm:$0xff]  ;;  %v112_v25 = vld [vmem:[#allocation5 + $0x1c8] sm:$0xff]  ;;  %v114_v26 = vld [vmem:[#allocation5 + $0x1d8] sm:$0xff] }
  0x3b   :  { %173 = vmatprep.subr.bf16.mxu0 %v130_v32  ;;  %247 = vmatprep.subr.bf16.mxu1 %v130_v32  ;;  %v145_v27 = vpack.c.bf16 %v109_v24, %v107_v23  ;;  %v148_v28 = vpack.c.bf16 %v114_v26, %v112_v25  ;;  %v111_v29 = vld [vmem:[#allocation5 + $0x1c0] sm:$0xff]  ;;  %v113_v30 = vld [vmem:[#allocation5 + $0x1d0] sm:$0xff]  ;;  %v116_v31 = vld [vmem:[#allocation5 + $0x1e8] sm:$0xff] }
  0x3c   :  { %v118_v32 = vld [vmem:[#allocation5 + $0x1f8] sm:$0xff]  ;;  %v147_v33 = vpack.c.bf16 %v113_v30, %v111_v29  ;;  %v115_v35 = vld [vmem:[#allocation5 + $0x1e0] sm:$0xff]  ;;  %v117_v36 = vld [vmem:[#allocation5 + $0x1f0] sm:$0xff] }
  0x3d   :  { %v150_v34 = vpack.c.bf16 %v118_v32, %v116_v31  ;;  %v149_v38 = vpack.c.bf16 %v117_v36, %v115_v35  ;;  %v45_v39 = vld [vmem:[#allocation2 + $0x10] sm:$0xff]  ;;  %v151_v47 = vld [vmem:[%s426_s2] sm:$0x3]  ;;  %s323_s2 = scalar_lea.vmem %s230_s12, 1024 }
  0x3e   :  { %174 = vmatpush1.bf16.msra.mxu0 %v129_v37  ;;  %263 = vmatpush1.bf16.msra.mxu1 %v129_v37  ;;  %v43_v37 = vld [vmem:[#allocation2] sm:$0xff]  ;;  %v49_v41 = vld [vmem:[#allocation2 + $0x30] sm:$0xff]  ;;  %p324_p2 = scmp.ne.s32.totalorder %s230_s12, %s323_s2  ;;  %p329_p4 = scmp.lt.s32.totalorder %s323_s2, %s323_s2 }
  0x3f   :  { %175 = vmatprep.subr.bf16.mxu0 %v132_v40  ;;  %248 = vmatprep.subr.bf16.mxu1 %v132_v40  ;;  %v47_v40 = vld [vmem:[#allocation2 + $0x20] sm:$0xff]  ;;  %v51_v42 = vpack.c.bf16 %v45_v39, %v43_v37 }
  0x40   :  { %v53_v43 = vpack.c.bf16 %v49_v41, %v47_v40  ;;  %p330_p5 = por %p329_p4, %p328_p3 }
  0x42   :  { %176 = vmatpush1.bf16.msra.mxu0 %v131_v49  ;;  %264 = vmatpush1.bf16.msra.mxu1 %v131_v49  ;;  %v156_v49 = vrot.slane %v151_v47, %v155_v46  ;;  %p331_p6 = pnand %p330_p5, %p324_p2 }
  0x43   :  { %177 = vmatprep.subr.bf16.mxu0 %v134_v50  ;;  %249 = vmatprep.subr.bf16.mxu1 %v134_v50  ;;  %v160_v50 = vrot.slane %v151_v47, %v159_v48 }
  0x46   :  { %178 = vmatpush1.bf16.msra.mxu0 %v133_v55  ;;  %265 = vmatpush1.bf16.msra.mxu1 %v133_v55 }
  0x47   :  { %179 = vmatprep.subr.bf16.mxu0 %v136_v56  ;;  %250 = vmatprep.subr.bf16.mxu1 %v136_v56 }
  0x4a   :  { %180 = vmatpush1.bf16.msra.mxu0 %v135_v61  ;;  %266 = vmatpush1.bf16.msra.mxu1 %v135_v61 }
  0x4b   :  { %181 = vmatprep.subr.bf16.mxu0 %v138_v62  ;;  %251 = vmatprep.subr.bf16.mxu1 %v138_v62 }
  0x4e   :  { %182 = vmatpush1.bf16.msra.mxu0 %v137_v3  ;;  %267 = vmatpush1.bf16.msra.mxu1 %v137_v3 }
  0x4f   :  { %183 = vmatprep.subr.bf16.mxu0 %v140_v4  ;;  %252 = vmatprep.subr.bf16.mxu1 %v140_v4 }
  0x52   :  { %184 = vmatpush1.bf16.msra.mxu0 %v139_v9  ;;  %268 = vmatpush1.bf16.msra.mxu1 %v139_v9 }
  0x53   :  { %185 = vmatprep.subr.bf16.mxu0 %v142_v10  ;;  %253 = vmatprep.subr.bf16.mxu1 %v142_v10 }
  0x56   :  { %186 = vmatpush1.bf16.msra.mxu0 %v141_v15  ;;  %269 = vmatpush1.bf16.msra.mxu1 %v141_v15 }
  0x57   :  { %187 = vmatprep.subr.bf16.mxu0 %v144_v16  ;;  %254 = vmatprep.subr.bf16.mxu1 %v144_v16 }
  0x5a   :  { %188 = vmatpush1.bf16.msra.mxu0 %v143_v21  ;;  %270 = vmatpush1.bf16.msra.mxu1 %v143_v21 }
  0x5b   :  { %189 = vmatprep.subr.bf16.mxu0 %v146_v22  ;;  %255 = vmatprep.subr.bf16.mxu1 %v146_v22 }
  0x5e   :  { %190 = vmatpush1.bf16.msra.mxu0 %v145_v27  ;;  %271 = vmatpush1.bf16.msra.mxu1 %v145_v27 }
  0x5f   :  { %191 = vmatprep.subr.bf16.mxu0 %v148_v28  ;;  %256 = vmatprep.subr.bf16.mxu1 %v148_v28 }
  0x62   :  { %192 = vmatpush1.bf16.msra.mxu0 %v147_v33  ;;  %272 = vmatpush1.bf16.msra.mxu1 %v147_v33 }
  0x63   :  { %193 = vmatprep.subr.bf16.mxu0 %v150_v34  ;;  %257 = vmatprep.subr.bf16.mxu1 %v150_v34 }
  0x66   :  { %194 = vmatpush1.bf16.msra.mxu0 %v149_v38  ;;  %273 = vmatpush1.bf16.msra.mxu1 %v149_v38 }
  0x69   :  { %196 = vmatmul.mubr.bf16.vlgmr.msra.gmra.mrb[0].mxu0 %v51_v42  ;;  %206 = vmatmul.mubr.bf16.vlgmr.msra.gmra.mrb[0].mxu1 %v53_v43 }
 0x13c   :  { %v197_v51 = vpop.f32.mrb[0].mxu0  ;;  %v207_v52 = vpop.f32.mrb[0].mxu1 }
 0x13d   :  { %v198_v53 = vadd.f32 %v197_v51, %v156_v49  ;;  %v208_v54 = vadd.f32 %v207_v52, %v156_v49  ;;  %v199_v55 = vpop.f32.mrb[1].mxu0  ;;  %v209_v56 = vpop.f32.mrb[1].mxu1 }
 0x13e   :  { %v200_v57 = vadd.f32 %v199_v55, %v160_v50  ;;  %v210_v58 = vadd.f32 %v209_v56, %v160_v50  ;;  %v201_v59 = vpop.f32.mrb[2].mxu0  ;;  %v211_v60 = vpop.f32.mrb[2].mxu1 }
 0x13f   :  { %216 = vst [vmem:[#allocation7] sm:$0xff] %v198_v53  ;;  %220 = vst [vmem:[#allocation7 + $0x20] sm:$0xff] %v208_v54  ;;  %v202_v61 = vadd.f32 %v201_v59, %v156_v49  ;;  %v212_v62 = vadd.f32 %v211_v60, %v156_v49  ;;  %v203_v63 = vpop.f32.mrb[3].mxu0  ;;  %v213_v0 = vpop.f32.mrb[3].mxu1 }
 0x140   :  { %217 = vst [vmem:[#allocation7 + $0x8] sm:$0xff] %v200_v57  ;;  %221 = vst [vmem:[#allocation7 + $0x28] sm:$0xff] %v210_v58  ;;  %v204_v1 = vadd.f32 %v203_v63, %v160_v50  ;;  %v214_v2 = vadd.f32 %v213_v0, %v160_v50 }
 0x141   :  { %218 = vst [vmem:[#allocation7 + $0x10] sm:$0xff] %v202_v61  ;;  %222 = vst [vmem:[#allocation7 + $0x30] sm:$0xff] %v212_v62 }
 0x142   :  { %219 = vst [vmem:[#allocation7 + $0x18] sm:$0xff] %v204_v1  ;;  %223 = vst [vmem:[#allocation7 + $0x38] sm:$0xff] %v214_v2 }
 0x143   :  { %334 = shalt.err (!%p331_p6)
}
 0x144   :  { %s335_s15 = scalar_lea.hbm %s427_s3, 1024 }
 0x145   :  { %p336_p7 = scmp.ne.s32.totalorder %s427_s3, %s335_s15  ;;  %p339_p8 = scmp.lt.u32.totalorder %s335_s15, %s427_s3 }
 0x147   :  { %p341_p9 = pnand %p339_p8, %p336_p7 }
 0x149   :  { %344 = shalt.err (!%p341_p9)
}
 0x14a   :  { %235 = dma.vmem_to_hbm [thread:$0]  %s230_s12, 1024, %s427_s3, [#allocation4], %s352_s22, %s352_s22, %s353_s23  }
 0x14b   :  { %349 = dma.done.wait [#allocation4], 1024  }
 0x14c   :  { %350 = vsyncadd [#allocation4], 4294966272 }
 0x14d   :  { %239 = vsyncpa [#allocation3], 1 }
 0x14e   :  { %240 = vsyncpa [#allocation6], 1 }
 0x14f   :  { %241 = vsyncpa [#allocation4], 1 }

</bundles_post_ra>
